<compile_context>
chip_gen: v6e
topology: v6e:2x2x1
jax: 0.10.0
libtpu: 0.0.40
codegen_flags: <defaults>
</compile_context>

<pallas_src>
import functools

import jax
import jax.numpy as jnp
from jax import lax
from jax.experimental import pallas as pl
from jax.experimental.pallas import tpu as pltpu


def _round_up(x, m):
    return ((x + m - 1) // m) * m


def critic_kernel(x_ref, w1_ref, b1_ref, w2_ref, b2_ref, w3_ref, b3_ref, o_ref):
    """One batch tile of the fused critic MLP.

    x_ref : (TB, D)   f32  (cast to bf16 for the MXU)
    w1_ref: (D, H1)   bf16    b1_ref: (1, H1) f32
    w2_ref: (H1, H2)  bf16    b2_ref: (1, H2) f32
    w3_ref: (1, H2)   bf16    b3_ref: (1, 1)  f32
    o_ref : (1, TB)   f32  (lane-dense slab; wrapper reshapes to (B, 1))
    """
    x = x_ref[...].astype(jnp.bfloat16)

    # fc1 + ReLU: bf16 MXU inputs, f32 accumulate; bias+ReLU in f32 on the VPU,
    # then materialize the intermediate in bf16 (halves spill traffic).
    h1 = jnp.dot(x, w1_ref[...], preferred_element_type=jnp.float32)
    h1 = jnp.maximum(h1 + b1_ref[...], 0.0).astype(jnp.bfloat16)

    # fc2 + ReLU.
    h2 = jnp.dot(h1, w2_ref[...], preferred_element_type=jnp.float32)
    h2 = jnp.maximum(h2 + b2_ref[...], 0.0).astype(jnp.bfloat16)

    # fc3 (output width 1): (1, H2) x (TB, H2)^T on the MXU -> (1, TB) directly
    # lane-dense, instead of a 256-wide XLU reduce + sublane->lane relayout.
    v = lax.dot_general(
        w3_ref[...], h2,
        dimension_numbers=(((1,), (1,)), ((), ())),
        preferred_element_type=jnp.float32,
    )
    o_ref[...] = (v + b3_ref[...]).astype(o_ref.dtype)


@functools.partial(jax.jit, static_argnames=("block_batch",))
def critic_forward(state, prepared_params, *, block_batch=1024):
    """Fused critic MLP: batch-tiled Pallas call, weights resident in VMEM.

    `prepared_params` must come from prepare_params() (weights pre-cast to bf16).
    """
    w1b, b1, w2b, b2, w3row, b3 = prepared_params
    B, D = state.shape
    H1 = w1b.shape[1]
    H2 = w2b.shape[1]

    # --- batch tiling -------------------------------------------------------
    # Tile size must be a multiple of 128 (the (1, TB) output block's lane dim).
    block_batch = max(128, _round_up(block_batch, 128))

    B128 = _round_up(B, 128)        # pad batch only to 128-row granularity
    n128 = B128 // 128              # number of 128-row chunks
    t = min(block_batch // 128, n128)
    if n128 >= 2:
        # Ensure >= 2 grid steps so the "parallel" axis can use both v7x TCs;
        # costs at most one extra ~0.35 us step on single-TC v5e/v6e.
        t = min(t, pl.cdiv(n128, 2))
    TB = t * 128
    num_tiles = pl.cdiv(n128, t)    # last tile may be partial (Pallas masks it)

    if B128 != B:
        state = jnp.pad(state, ((0, B128 - B), (0, 0)))

    out = pl.pallas_call(
        critic_kernel,
        out_shape=jax.ShapeDtypeStruct((1, num_tiles * TB), jnp.float32),
        grid=(num_tiles,),
        in_specs=[
            pl.BlockSpec((TB, D), lambda i: (i, 0)),     # x: tiled on batch
            pl.BlockSpec((D, H1), lambda i: (0, 0)),     # weights/biases: constant
            pl.BlockSpec((1, H1), lambda i: (0, 0)),     #   index_maps -> VMEM-resident,
            pl.BlockSpec((H1, H2), lambda i: (0, 0)),    #   no re-DMA across steps
            pl.BlockSpec((1, H2), lambda i: (0, 0)),
            pl.BlockSpec((1, H2), lambda i: (0, 0)),
            pl.BlockSpec((1, 1), lambda i: (0, 0)),
        ],
        out_specs=pl.BlockSpec((1, TB), lambda i: (0, i)),  # lane-dense output slab
        compiler_params=pltpu.CompilerParams(
            dimension_semantics=("parallel",),              # v7x: shard batch across TCs
        ),
    )(state, w1b, b1, w2b, b2, w3row, b3)

    # (1, num_tiles*TB) slab -> (B, 1) value vector (drop batch padding).
    return out[0, :B][:, None]


def prepare_params(params):
    """One-time (outside-jit) cast/layout of weights for the kernel.

    Keeps per-call latency low: no convert launches inside critic_forward.
    """
    w1, b1, w2, b2, w3, b3 = params
    H2 = w2.shape[1]
    return (
        w1.astype(jnp.bfloat16),
        b1.astype(jnp.float32),
        w2.astype(jnp.bfloat16),
        b2.astype(jnp.float32),
        w3.reshape(1, H2).astype(jnp.bfloat16),
        b3.reshape(1, 1).astype(jnp.float32),
    )


def init_params(key, input_dims, fc1_dims=256, fc2_dims=256):
    """Deterministic init mimicking nn.Linear's U(-1/sqrt(fan_in), 1/sqrt(fan_in))."""
    def linear(k, fan_in, fan_out):
        kw, kb = jax.random.split(k)
        bound = 1.0 / jnp.sqrt(jnp.float32(fan_in))
        w = jax.random.uniform(kw, (fan_in, fan_out), jnp.float32, -bound, bound)
        b = jax.random.uniform(kb, (1, fan_out), jnp.float32, -bound, bound)
        return w, b

    k1, k2, k3 = jax.random.split(key, 3)
    w1, b1 = linear(k1, input_dims, fc1_dims)
    w2, b2 = linear(k2, fc1_dims, fc2_dims)
    w3, b3 = linear(k3, fc2_dims, 1)
    return (w1, b1, w2, b2, w3, b3)


def critic_reference(state, params):
    """Pure-JAX f32 reference for correctness checking."""
    w1, b1, w2, b2, w3, b3 = params
    h1 = jnp.maximum(state @ w1 + b1, 0.0)
    h2 = jnp.maximum(h1 @ w2 + b2, 0.0)
    return h2 @ w3 + b3


def _check(value, ref, rel_tol=3e-2):
    # bf16 MXU inputs / bf16 intermediates (f32 accumulate) relax the tolerance
    # vs. the pure-f32 reference. Intentional precision tradeoff for a value head.
    err = float(jnp.max(jnp.abs(value - ref)))
    scale = float(jnp.max(jnp.abs(ref))) + 1e-6
    assert err <= rel_tol * scale + 1e-5, (err, scale)


if __name__ == "__main__":
    key = jax.random.PRNGKey(0)
    k_params, k_s1, k_s2, k_s3 = jax.random.split(key, 4)

    INPUT_DIMS = 32
    params = init_params(k_params, INPUT_DIMS, fc1_dims=256, fc2_dims=256)
    prepared = prepare_params(params)

    # Small RL-style batch: single 128-row (padded) tile.
    state_small = jax.random.normal(k_s1, (8, INPUT_DIMS), jnp.float32)
    v_small = jax.block_until_ready(critic_forward(state_small, prepared))
    assert v_small.shape == (8, 1), v_small.shape
    _check(v_small, critic_reference(state_small, params))

    # Mid-size batch: 2 grid steps (megacore split) with a partial last tile.
    state_mid = jax.random.normal(k_s2, (384, INPUT_DIMS), jnp.float32)
    v_mid = jax.block_until_ready(critic_forward(state_mid, prepared))
    assert v_mid.shape == (384, 1), v_mid.shape
    _check(v_mid, critic_reference(state_mid, params))

    # Large batch: exercises the big (TB=1024) tiles.
    state_big = jax.random.normal(k_s3, (2048, INPUT_DIMS), jnp.float32)
    v_big = jax.block_until_ready(critic_forward(state_big, prepared))
    assert v_big.shape == (2048, 1), v_big.shape
    _check(v_big, critic_reference(state_big, params))

    print("KERNEL_OK")
</pallas_src>

<mosaic_0001>
module attributes {stable_mosaic.version = 11 : i64} {
  func.func @critic_kernel(%arg0: i32, %arg1: memref<128x32xf32, #tpu.memory_space<vmem>>, %arg2: memref<32x256xbf16, #tpu.memory_space<vmem>>, %arg3: memref<1x256xf32, #tpu.memory_space<vmem>>, %arg4: memref<256x256xbf16, #tpu.memory_space<vmem>>, %arg5: memref<1x256xf32, #tpu.memory_space<vmem>>, %arg6: memref<1x256xbf16, #tpu.memory_space<vmem>>, %arg7: memref<1x1xf32, #tpu.memory_space<vmem>>, %arg8: memref<1x128xf32, #tpu.memory_space<vmem>>) attributes {dimension_semantics = [#tpu.dimension_semantics<parallel>], iteration_bounds = array<i64: 1>, scalar_prefetch = 0 : i64, scratch_operands = 0 : i64, tpu.core_type = #tpu.core_type<tc>, window_params = [{transform_indices = @transform_0, window_bounds = array<i64: 128, 32>}, {pipeline_mode = #tpu.pipeline_mode<synchronous>, transform_indices = @transform_1, window_bounds = array<i64: 32, 256>}, {pipeline_mode = #tpu.pipeline_mode<synchronous>, transform_indices = @transform_2, window_bounds = array<i64: 1, 256>}, {pipeline_mode = #tpu.pipeline_mode<synchronous>, transform_indices = @transform_3, window_bounds = array<i64: 256, 256>}, {pipeline_mode = #tpu.pipeline_mode<synchronous>, transform_indices = @transform_4, window_bounds = array<i64: 1, 256>}, {pipeline_mode = #tpu.pipeline_mode<synchronous>, transform_indices = @transform_5, window_bounds = array<i64: 1, 256>}, {pipeline_mode = #tpu.pipeline_mode<synchronous>, transform_indices = @transform_6, window_bounds = array<i64: 1, 1>}, {transform_indices = @transform_7, window_bounds = array<i64: 1, 128>}]} {
    %c0 = arith.constant 0 : index
    %c0_0 = arith.constant 0 : index
    %0 = vector.load %arg1[%c0, %c0_0] : memref<128x32xf32, #tpu.memory_space<vmem>>, vector<128x32xf32>
    %1 = arith.truncf %0 : vector<128x32xf32> to vector<128x32xbf16>
    %c0_1 = arith.constant 0 : index
    %c0_2 = arith.constant 0 : index
    %2 = vector.load %arg2[%c0_1, %c0_2] : memref<32x256xbf16, #tpu.memory_space<vmem>>, vector<32x256xbf16>
    %cst = arith.constant dense<0.000000e+00> : vector<128x256xf32>
    %3 = tpu.matmul %1, %2, %cst {dimension_numbers = #tpu.dot_dimension_numbers<[1], [0], [0], [1], [0, 0, 1, 1], [], []>} : vector<128x32xbf16>, vector<32x256xbf16>, vector<128x256xf32> -> vector<128x256xf32>
    %c0_3 = arith.constant 0 : index
    %c0_4 = arith.constant 0 : index
    %4 = vector.load %arg3[%c0_3, %c0_4] : memref<1x256xf32, #tpu.memory_space<vmem>>, vector<1x256xf32>
    %5 = vector.broadcast %4 : vector<1x256xf32> to vector<128x256xf32>
    %6 = arith.addf %3, %5 : vector<128x256xf32>
    %cst_5 = arith.constant 0.000000e+00 : f32
    %7 = vector.broadcast %cst_5 : f32 to vector<128x256xf32>
    %8 = arith.maximumf %6, %7 : vector<128x256xf32>
    %9 = arith.truncf %8 : vector<128x256xf32> to vector<128x256xbf16>
    %c0_6 = arith.constant 0 : index
    %c0_7 = arith.constant 0 : index
    %10 = vector.load %arg4[%c0_6, %c0_7] : memref<256x256xbf16, #tpu.memory_space<vmem>>, vector<256x256xbf16>
    %cst_8 = arith.constant dense<0.000000e+00> : vector<128x256xf32>
    %11 = tpu.matmul %9, %10, %cst_8 {dimension_numbers = #tpu.dot_dimension_numbers<[1], [0], [0], [1], [0, 0, 1, 1], [], []>} : vector<128x256xbf16>, vector<256x256xbf16>, vector<128x256xf32> -> vector<128x256xf32>
    %c0_9 = arith.constant 0 : index
    %c0_10 = arith.constant 0 : index
    %12 = vector.load %arg5[%c0_9, %c0_10] : memref<1x256xf32, #tpu.memory_space<vmem>>, vector<1x256xf32>
    %13 = vector.broadcast %12 : vector<1x256xf32> to vector<128x256xf32>
    %14 = arith.addf %11, %13 : vector<128x256xf32>
    %cst_11 = arith.constant 0.000000e+00 : f32
    %15 = vector.broadcast %cst_11 : f32 to vector<128x256xf32>
    %16 = arith.maximumf %14, %15 : vector<128x256xf32>
    %17 = arith.truncf %16 : vector<128x256xf32> to vector<128x256xbf16>
    %c0_12 = arith.constant 0 : index
    %c0_13 = arith.constant 0 : index
    %18 = vector.load %arg6[%c0_12, %c0_13] : memref<1x256xbf16, #tpu.memory_space<vmem>>, vector<1x256xbf16>
    %cst_14 = arith.constant dense<0.000000e+00> : vector<1x128xf32>
    %19 = tpu.matmul %18, %17, %cst_14 {dimension_numbers = #tpu.dot_dimension_numbers<[1], [1], [0], [0], [0, 0, 1, 0], [], []>} : vector<1x256xbf16>, vector<128x256xbf16>, vector<1x128xf32> -> vector<1x128xf32>
    %c0_15 = arith.constant 0 : index
    %c0_16 = arith.constant 0 : index
    %20 = vector.load %arg7[%c0_15, %c0_16] : memref<1x1xf32, #tpu.memory_space<vmem>>, vector<1x1xf32>
    %21 = vector.broadcast %20 : vector<1x1xf32> to vector<1x128xf32>
    %22 = arith.addf %19, %21 : vector<1x128xf32>
    %c0_17 = arith.constant 0 : index
    %c0_18 = arith.constant 0 : index
    %23 = vector.load %arg8[%c0_17, %c0_18] : memref<1x128xf32, #tpu.memory_space<vmem>>, vector<1x128xf32>
    tpu.vector_store %arg8[%c0_17, %c0_18], %22 {strides = array<i32>} : memref<1x128xf32, #tpu.memory_space<vmem>>, vector<1x128xf32>,
    return
  }
  func.func @transform_0(%arg0: i32) -> (i32, i32) {
    %c0_i32 = arith.constant 0 : i32
    %c0_i32_0 = arith.constant 0 : i32
    return %arg0, %c0_i32 : i32, i32
  }
  func.func @transform_1(%arg0: i32) -> (i32, i32) {
    %c0_i32 = arith.constant 0 : i32
    %c0_i32_0 = arith.constant 0 : i32
    %c0_i32_1 = arith.constant 0 : i32
    return %c0_i32, %c0_i32_0 : i32, i32
  }
  func.func @transform_2(%arg0: i32) -> (i32, i32) {
    %c0_i32 = arith.constant 0 : i32
    %c0_i32_0 = arith.constant 0 : i32
    %c0_i32_1 = arith.constant 0 : i32
    return %c0_i32, %c0_i32_0 : i32, i32
  }
  func.func @transform_3(%arg0: i32) -> (i32, i32) {
    %c0_i32 = arith.constant 0 : i32
    %c0_i32_0 = arith.constant 0 : i32
    %c0_i32_1 = arith.constant 0 : i32
    return %c0_i32, %c0_i32_0 : i32, i32
  }
  func.func @transform_4(%arg0: i32) -> (i32, i32) {
    %c0_i32 = arith.constant 0 : i32
    %c0_i32_0 = arith.constant 0 : i32
    %c0_i32_1 = arith.constant 0 : i32
    return %c0_i32, %c0_i32_0 : i32, i32
  }
  func.func @transform_5(%arg0: i32) -> (i32, i32) {
    %c0_i32 = arith.constant 0 : i32
    %c0_i32_0 = arith.constant 0 : i32
    %c0_i32_1 = arith.constant 0 : i32
    return %c0_i32, %c0_i32_0 : i32, i32
  }
  func.func @transform_6(%arg0: i32) -> (i32, i32) {
    %c0_i32 = arith.constant 0 : i32
    %c0_i32_0 = arith.constant 0 : i32
    %c0_i32_1 = arith.constant 0 : i32
    return %c0_i32, %c0_i32_0 : i32, i32
  }
  func.func @transform_7(%arg0: i32) -> (i32, i32) {
    %c0_i32 = arith.constant 0 : i32
    %c0_i32_0 = arith.constant 0 : i32
    return %c0_i32, %arg0 : i32, i32
  }
}

</mosaic_0001>

<bundles_post_ra>
// kernel: critic_forward.1
= control target key start
LH: loop header
LB: loop body
LE: loop exit
PB: predicated region body
PF: predicated region fallthrough
CT: control target
= control target key end

     0   :  { %s1125_s0 = inlined_call_operand.vmem [shape: f32[128,32], index: 0, kind: input, shape index: {}]   ;;  %s1126_s1 = inlined_call_operand.vmem [shape: bf16[32,256], index: 1, kind: input, shape index: {}]   ;;  %s1127_s2 = inlined_call_operand.vmem [shape: f32[1,256], index: 2, kind: input, shape index: {}]   ;;  %s1128_s3 = inlined_call_operand.hbm [shape: bf16[256,256], index: 3, kind: input, shape index: {}]   ;;  %s1129_s4 = inlined_call_operand.vmem [shape: f32[1,256], index: 4, kind: input, shape index: {}]   ;;  %s1130_s5 = inlined_call_operand.vmem [shape: bf16[1,256], index: 5, kind: input, shape index: {}]   ;;  %s1131_s6 = inlined_call_operand.<no memory space> [shape: f32[1,1], index: 6, kind: input, shape index: {}]   ;;  %s1132_s7 = inlined_call_operand.vmem [shape: f32[1,128], index: 7, kind: output, shape index: {}]  }
   0x1   :  { %v12_v0 = vstv %s1131_s6 }
   0x2   :  { %13 = vst [vmem:[#allocation2] sm:$0x1] %v12_v0 }
   0x3   :  { %14 = vsyncpa [#allocation4], 0  ;;  %s863_s26 = smov [#allocation3]  }
   0x4   :  { %s26_s27 = sshll.u32 %s863_s26, 4  ;;  %s27_s27 = int_to_ptr.vmem [resolvable:$true] %s26_s27 }
   0x5   :  { %s849_s28 = scalar_lea.vmem %s27_s27, 4096  ;;  %p854_p1 = scmp.lt.s32.totalorder %s27_s27, %s27_s27 }
   0x6   :  { %p850_p0 = scmp.ne.s32.totalorder %s27_s27, %s849_s28  ;;  %p855_p2 = scmp.lt.s32.totalorder %s849_s28, %s849_s28 }
   0x8   :  { %p856_p3 = por %p855_p2, %p854_p1 }
   0xa   :  { %p857_p4 = pnand %p856_p3, %p850_p0 }
   0xc   :  { %860 = shalt.err (!%p857_p4)
}
   0xd   :  { %s864_s29 = smov 128   ;;  %s865_s30 = smov 8  }
   0xe   :  { %32 = dma.hbm_to_vmem [thread:$0]  %s1128_s3, 4096, %s27_s27, [#allocation4], %s864_s29, %s864_s29, %s865_s30  }
   0xf   :  { %861 = dma.done.wait [#allocation4], 4096  }
  0x10   :  { %862 = vsyncadd [#allocation4], 4294963200  ;;  %v866_v1 = vmov 0   ;;  %v787_v2 = vld [vmem:[%s1126_s1 + $0x14] ss:$8 sps:$4 sm:$0xff]   ;;  %v43_v6 = vld [vmem:[%s1125_s0] sm:$0xff]  ;;  %v73_v62 = vlaneseq }
  0x11   :  { %160 = vmatprep.mubr.bf16.mxu0 %v866_v1  ;;  %786 = vset.pattern.permute.xlu0 %v866_v1  ;;  %v789_v3 = vld [vmem:[%s1126_s1 + $0x10] ss:$8 sps:$4 sm:$0xff]   ;;  %v790_v4 = vld [vmem:[%s1126_s1 + $0x4] ss:$8 sps:$4 sm:$0xff]   ;;  %v792_v5 = vld [vmem:[%s1126_s1] ss:$8 sps:$4 sm:$0xff]  }
  0x12   :  { %140 = vmatprep.subr.bf16.mxu0 %v787_v2  ;;  %v44_v7 = vld [vmem:[%s1125_s0 + $0x8] sm:$0xff]  ;;  %vm103_vm0 = vcmask 261120   ;;  %v793_v9 = vld [vmem:[#allocation3 + $0x74] ss:$8 sps:$4 sm:$0xff]   ;;  %v795_v10 = vld [vmem:[#allocation3 + $0x70] ss:$8 sps:$4 sm:$0xff]  }
  0x13   :  { %141 = vmatpush1.bf16.msra.mxu0 %v789_v3  ;;  %v59_v8 = vpack.c.bf16 %v44_v7, %v43_v6  ;;  %v45_v11 = vld [vmem:[%s1125_s0 + $0x10] sm:$0xff]  ;;  %493 = vmatprep.subr.bf16.mxu1 %v793_v9  ;;  %v46_v13 = vld [vmem:[%s1125_s0 + $0x18] sm:$0xff]  ;;  %v798_v14 = vld [vmem:[#allocation3 + $0x60] ss:$8 sps:$4 sm:$0xff]   ;;  %v991_v63 = vshrl.u32 %v73_v62, 7 }
  0x14   :  { %142 = vmatprep.subr.bf16.mxu0 %v790_v4  ;;  %v796_v12 = vld [vmem:[#allocation3 + $0x64] ss:$8 sps:$4 sm:$0xff]   ;;  %494 = vmatpush1.bf16.msra.mxu1 %v795_v10  ;;  %v799_v15 = vld [vmem:[#allocation3 + $0x54] ss:$8 sps:$4 sm:$0xff]   ;;  %v60_v16 = vpack.c.bf16 %v46_v13, %v45_v11  ;;  %v801_v17 = vld [vmem:[#allocation3 + $0x50] ss:$8 sps:$4 sm:$0xff]  }
  0x15   :  { %495 = vmatprep.subr.bf16.mxu1 %v796_v12  ;;  %v802_v18 = vld [vmem:[#allocation3 + $0x44] ss:$8 sps:$4 sm:$0xff]   ;;  %v804_v21 = vld [vmem:[#allocation3 + $0x40] ss:$8 sps:$4 sm:$0xff]   ;;  %v805_v22 = vld [vmem:[#allocation3 + $0x34] ss:$8 sps:$4 sm:$0xff]  }
  0x16   :  { %v47_v19 = vld [vmem:[%s1125_s0 + $0x20] sm:$0xff]  ;;  %v48_v20 = vld [vmem:[%s1125_s0 + $0x28] sm:$0xff]  ;;  %v807_v24 = vld [vmem:[#allocation3 + $0x30] ss:$8 sps:$4 sm:$0xff]   ;;  %v79_v0 = vsub.s32 1, %v991_v63 }
  0x17   :  { %143 = vmatpush1.bf16.msra.mxu0 %v792_v5  ;;  %v61_v23 = vpack.c.bf16 %v48_v20, %v47_v19  ;;  %v808_v25 = vld [vmem:[#allocation3 + $0x24] ss:$8 sps:$4 sm:$0xff]   ;;  %v50_v27 = vld [vmem:[%s1125_s0 + $0x38] sm:$0xff]  ;;  %v810_v28 = vld [vmem:[#allocation3 + $0x20] ss:$8 sps:$4 sm:$0xff]  }
  0x18   :  { %496 = vmatpush1.bf16.msra.mxu1 %v798_v14  ;;  %v49_v26 = vld [vmem:[%s1125_s0 + $0x30] sm:$0xff]  ;;  %v51_v33 = vld [vmem:[%s1125_s0 + $0x40] sm:$0xff]  ;;  %v52_v34 = vld [vmem:[%s1125_s0 + $0x48] sm:$0xff] }
  0x19   :  { %497 = vmatprep.subr.bf16.mxu1 %v799_v15  ;;  %v811_v29 = vld [vmem:[#allocation3 + $0x14] ss:$8 sps:$4 sm:$0xff]   ;;  %v62_v30 = vpack.c.bf16 %v50_v27, %v49_v26  ;;  %v813_v31 = vld [vmem:[#allocation3 + $0x10] ss:$8 sps:$4 sm:$0xff]   ;;  %v814_v32 = vld [vmem:[#allocation3 + $0x4] ss:$8 sps:$4 sm:$0xff]   ;;  %v63_v37 = vpack.c.bf16 %v52_v34, %v51_v33 }
  0x1a   :  { %740 = vmatmul.mubr.msk.bf16.vlgmr.msra.gmra.mxu0 %vm103_vm0, %v59_v8  ;;  %v816_v35 = vld [vmem:[#allocation3] ss:$8 sps:$4 sm:$0xff]   ;;  %v817_v36 = vld [vmem:[#allocation3 + $0xf4] ss:$8 sps:$4 sm:$0xff]   ;;  %v819_v38 = vld [vmem:[#allocation3 + $0xf0] ss:$8 sps:$4 sm:$0xff]  }
  0x1b   :  { %170 = vmatprep.mubr.bf16.mxu0 %v866_v1  ;;  %v820_v39 = vld [vmem:[#allocation3 + $0xe4] ss:$8 sps:$4 sm:$0xff]   ;;  %v54_v41 = vld [vmem:[%s1125_s0 + $0x58] sm:$0xff]  ;;  %v822_v42 = vld [vmem:[#allocation3 + $0xe0] ss:$8 sps:$4 sm:$0xff]  }
  0x1c   :  { %498 = vmatpush1.bf16.msra.mxu1 %v801_v17  ;;  %v53_v40 = vld [vmem:[%s1125_s0 + $0x50] sm:$0xff]  ;;  %v55_v47 = vld [vmem:[%s1125_s0 + $0x60] sm:$0xff]  ;;  %v56_v48 = vld [vmem:[%s1125_s0 + $0x68] sm:$0xff] }
  0x1d   :  { %499 = vmatprep.subr.bf16.mxu1 %v802_v18  ;;  %v823_v43 = vld [vmem:[#allocation3 + $0xd4] ss:$8 sps:$4 sm:$0xff]   ;;  %v64_v44 = vpack.c.bf16 %v54_v41, %v53_v40  ;;  %v825_v45 = vld [vmem:[#allocation3 + $0xd0] ss:$8 sps:$4 sm:$0xff]   ;;  %v826_v46 = vld [vmem:[#allocation3 + $0xc4] ss:$8 sps:$4 sm:$0xff]   ;;  %v65_v51 = vpack.c.bf16 %v56_v48, %v55_v47 }
  0x1e   :  { %v828_v49 = vld [vmem:[#allocation3 + $0xc0] ss:$8 sps:$4 sm:$0xff]   ;;  %v829_v50 = vld [vmem:[#allocation3 + $0xb4] ss:$8 sps:$4 sm:$0xff]   ;;  %v831_v52 = vld [vmem:[#allocation3 + $0xb0] ss:$8 sps:$4 sm:$0xff]  }
  0x1f   :  { %v57_v53 = vld [vmem:[%s1125_s0 + $0x70] sm:$0xff]  ;;  %v58_v54 = vld [vmem:[%s1125_s0 + $0x78] sm:$0xff]  ;;  %v834_v57 = vld [vmem:[#allocation3 + $0xa0] ss:$8 sps:$4 sm:$0xff]  }
  0x20   :  { %500 = vmatpush1.bf16.msra.mxu1 %v804_v21  ;;  %v66_v55 = vpack.c.bf16 %v58_v54, %v57_v53  ;;  %v832_v56 = vld [vmem:[#allocation3 + $0xa4] ss:$8 sps:$4 sm:$0xff]   ;;  %v835_v58 = vld [vmem:[#allocation3 + $0x94] ss:$8 sps:$4 sm:$0xff]   ;;  %v837_v59 = vld [vmem:[#allocation3 + $0x90] ss:$8 sps:$4 sm:$0xff]  }
  0x21   :  { %501 = vmatprep.subr.bf16.mxu1 %v805_v22  ;;  %v838_v60 = vld [vmem:[#allocation3 + $0x84] ss:$8 sps:$4 sm:$0xff]   ;;  %v840_v61 = vld [vmem:[#allocation3 + $0x80] ss:$8 sps:$4 sm:$0xff]  }
  0x22   :  { %741 = vmatmul.mubr.msk.bf16.gmra.mxu0 %vm103_vm0, %v60_v16  ;;  %v71_v2 = vld [vmem:[%s1127_s2] sm:$0x3] }
  0x23   :  { %180 = vmatprep.mubr.bf16.mxu0 %v866_v1  ;;  %v1002_v4 = vrot.slane %v71_v2, %v79_v0 }
  0x24   :  { %502 = vmatpush1.bf16.msra.mxu1 %v807_v24 }
  0x25   :  { %503 = vmatprep.subr.bf16.mxu1 %v808_v25 }
  0x28   :  { %504 = vmatpush1.bf16.msra.mxu1 %v810_v28 }
  0x29   :  { %505 = vmatprep.subr.bf16.mxu1 %v811_v29 }
  0x2a   :  { %742 = vmatmul.mubr.msk.bf16.gmra.mxu0 %vm103_vm0, %v61_v23 }
  0x2b   :  { %190 = vmatprep.mubr.bf16.mxu0 %v866_v1 }
  0x2c   :  { %506 = vmatpush1.bf16.msra.mxu1 %v813_v31 }
  0x2d   :  { %507 = vmatprep.subr.bf16.mxu1 %v814_v32 }
  0x30   :  { %508 = vmatpush1.bf16.msra.mxu1 %v816_v35 }
  0x31   :  { %509 = vmatprep.subr.bf16.mxu1 %v817_v36 }
  0x32   :  { %743 = vmatmul.mubr.msk.bf16.gmra.mxu0 %vm103_vm0, %v62_v30 }
  0x33   :  { %200 = vmatprep.mubr.bf16.mxu0 %v866_v1 }
  0x34   :  { %510 = vmatpush2.bf16.msra.mxu1 %v819_v38 }
  0x35   :  { %511 = vmatprep.subr.bf16.mxu1 %v820_v39 }
  0x38   :  { %512 = vmatpush2.bf16.msra.mxu1 %v822_v42 }
  0x39   :  { %513 = vmatprep.subr.bf16.mxu1 %v823_v43 }
  0x3a   :  { %744 = vmatmul.mubr.msk.bf16.gmra.mxu0 %vm103_vm0, %v63_v37 }
  0x3b   :  { %210 = vmatprep.mubr.bf16.mxu0 %v866_v1 }
  0x3c   :  { %514 = vmatpush2.bf16.msra.mxu1 %v825_v45 }
  0x3d   :  { %515 = vmatprep.subr.bf16.mxu1 %v826_v46 }
  0x40   :  { %516 = vmatpush2.bf16.msra.mxu1 %v828_v49 }
  0x41   :  { %517 = vmatprep.subr.bf16.mxu1 %v829_v50 }
  0x42   :  { %745 = vmatmul.mubr.msk.bf16.gmra.mxu0 %vm103_vm0, %v64_v44 }
  0x43   :  { %220 = vmatprep.mubr.bf16.mxu0 %v866_v1 }
  0x44   :  { %518 = vmatpush2.bf16.msra.mxu1 %v831_v52 }
  0x45   :  { %519 = vmatprep.subr.bf16.mxu1 %v832_v56 }
  0x48   :  { %520 = vmatpush2.bf16.msra.mxu1 %v834_v57 }
  0x49   :  { %521 = vmatprep.subr.bf16.mxu1 %v835_v58 }
  0x4a   :  { %746 = vmatmul.mubr.msk.bf16.gmra.mxu0 %vm103_vm0, %v65_v51 }
  0x4b   :  { %230 = vmatprep.mubr.bf16.mxu0 %v866_v1  ;;  %v995_v1 = vsub.s32 0, %v991_v63 }
  0x4c   :  { %522 = vmatpush2.bf16.msra.mxu1 %v837_v59 }
  0x4d   :  { %523 = vmatprep.subr.bf16.mxu1 %v838_v60  ;;  %v1005_v5 = vrot.slane %v71_v2, %v995_v1 }
  0x50   :  { %524 = vmatpush2.bf16.msra.mxu1 %v840_v61 }
  0x52   :  { %747 = vmatmul.mubr.msk.bf16.gmra.mxu0 %vm103_vm0, %v66_v55 }
  0xda   :  { %v162_v3 = vpop.f32.mrf.mxu0 }
  0xdb   :  { %v163_v10 = vadd.f32 %v162_v3, %v1005_v5 }
  0xdc   :  { %v164_v6 = vpop.f32.mrf.mxu0 }
  0xdd   :  { %v165_v8 = vadd.f32 %v164_v6, %v1002_v4  ;;  %v241_v17 = vmax.f32 %v163_v10, 0.0 }
  0xde   :  { %v166_v7 = vpop.f32.mrf.mxu0 }
  0xdf   :  { %v167_v9 = vadd.f32 %v166_v7, %v1005_v5  ;;  %v242_v15 = vmax.f32 %v165_v8, 0.0 }
  0xe0   :  { %v168_v11 = vpop.f32.mrf.mxu0 }
  0xe1   :  { %v169_v12 = vadd.f32 %v168_v11, %v1002_v4  ;;  %v243_v13 = vmax.f32 %v167_v9, 0.0 }
  0xe2   :  { %v172_v14 = vpop.f32.mrf.mxu0 }
  0xe3   :  { %v244_v16 = vmax.f32 %v169_v12, 0.0  ;;  %v273_v20 = vpack.c.bf16 %v243_v13, %v241_v17  ;;  %v173_v24 = vadd.f32 %v172_v14, %v1005_v5 }
  0xe4   :  { %v174_v18 = vpop.f32.mrf.mxu0 }
  0xe5   :  { %v274_v19 = vpack.c.bf16 %v244_v16, %v242_v15  ;;  %v175_v22 = vadd.f32 %v174_v18, %v1002_v4  ;;  %v245_v31 = vmax.f32 %v173_v24, 0.0 }
  0xe6   :  { %v176_v21 = vpop.f32.mrf.mxu0 }
  0xe7   :  { %v177_v23 = vadd.f32 %v176_v21, %v1005_v5  ;;  %525 = vmatprep.mubr.bf16.mxu1 %v274_v19  ;;  %v246_v29 = vmax.f32 %v175_v22, 0.0 }
  0xe8   :  { %v178_v25 = vpop.f32.mrf.mxu0  ;;  %526 = vmatmul.mubr.bf16.vlgmr.msra.gmra.mxu1 %v273_v20 }
  0xe9   :  { %v179_v26 = vadd.f32 %v178_v25, %v1002_v4  ;;  %v247_v27 = vmax.f32 %v177_v23, 0.0 }
  0xea   :  { %v182_v28 = vpop.f32.mrf.mxu0 }
  0xeb   :  { %v248_v30 = vmax.f32 %v179_v26, 0.0  ;;  %v275_v34 = vpack.c.bf16 %v247_v27, %v245_v31  ;;  %v183_v38 = vadd.f32 %v182_v28, %v1005_v5 }
  0xec   :  { %v184_v32 = vpop.f32.mrf.mxu0 }
  0xed   :  { %v276_v33 = vpack.c.bf16 %v248_v30, %v246_v29  ;;  %v185_v36 = vadd.f32 %v184_v32, %v1002_v4  ;;  %v249_v45 = vmax.f32 %v183_v38, 0.0 }
  0xee   :  { %v186_v35 = vpop.f32.mrf.mxu0 }
  0xef   :  { %v187_v37 = vadd.f32 %v186_v35, %v1005_v5  ;;  %535 = vmatprep.mubr.bf16.mxu1 %v276_v33  ;;  %v250_v43 = vmax.f32 %v185_v36, 0.0 }
  0xf0   :  { %v188_v39 = vpop.f32.mrf.mxu0  ;;  %536 = vmatmul.mubr.bf16.gmra.mxu1 %v275_v34 }
  0xf1   :  { %v189_v40 = vadd.f32 %v188_v39, %v1002_v4  ;;  %v251_v41 = vmax.f32 %v187_v37, 0.0 }
  0xf2   :  { %v192_v42 = vpop.f32.mrf.mxu0 }
  0xf3   :  { %v252_v44 = vmax.f32 %v189_v40, 0.0  ;;  %v277_v48 = vpack.c.bf16 %v251_v41, %v249_v45  ;;  %v193_v52 = vadd.f32 %v192_v42, %v1005_v5 }
  0xf4   :  { %v194_v46 = vpop.f32.mrf.mxu0 }
  0xf5   :  { %v278_v47 = vpack.c.bf16 %v252_v44, %v250_v43  ;;  %v195_v50 = vadd.f32 %v194_v46, %v1002_v4  ;;  %v253_v59 = vmax.f32 %v193_v52, 0.0 }
  0xf6   :  { %v196_v49 = vpop.f32.mrf.mxu0 }
  0xf7   :  { %v197_v51 = vadd.f32 %v196_v49, %v1005_v5  ;;  %545 = vmatprep.mubr.bf16.mxu1 %v278_v47  ;;  %v254_v57 = vmax.f32 %v195_v50, 0.0 }
  0xf8   :  { %v198_v53 = vpop.f32.mrf.mxu0  ;;  %546 = vmatmul.mubr.bf16.gmra.mxu1 %v277_v48 }
  0xf9   :  { %v199_v54 = vadd.f32 %v198_v53, %v1002_v4  ;;  %v255_v55 = vmax.f32 %v197_v51, 0.0 }
  0xfa   :  { %v202_v56 = vpop.f32.mrf.mxu0 }
  0xfb   :  { %v256_v58 = vmax.f32 %v199_v54, 0.0  ;;  %v279_v62 = vpack.c.bf16 %v255_v55, %v253_v59  ;;  %v203_v7 = vadd.f32 %v202_v56, %v1005_v5  ;;  %v867_v59 = vmov 1966171168  }
  0xfc   :  { %v204_v60 = vpop.f32.mrf.mxu0 }
  0xfd   :  { %v280_v61 = vpack.c.bf16 %v256_v58, %v254_v57  ;;  %v205_v3 = vadd.f32 %v204_v60, %v1002_v4  ;;  %v257_v14 = vmax.f32 %v203_v7, 0.0  ;;  %v321_v58 = vld [vmem:[%s1129_s4] sm:$0x3]  ;;  %v675_v60 = vunpack.c.l.s4 %v867_v59 }
  0xfe   :  { %v206_v2 = vpop.f32.mrf.mxu0 }
  0xff   :  { %v207_v6 = vadd.f32 %v206_v2, %v1005_v5  ;;  %555 = vmatprep.mubr.bf16.mxu1 %v280_v61  ;;  %v258_v12 = vmax.f32 %v205_v3, 0.0  ;;  %v1048_v61 = vrot.slane %v321_v58, %v995_v1 }
 0x100   :  { %v208_v8 = vpop.f32.mrf.mxu0  ;;  %556 = vmatmul.mubr.bf16.gmra.mxu1 %v279_v62 }
 0x101   :  { %v209_v9 = vadd.f32 %v208_v8, %v1002_v4  ;;  %v259_v10 = vmax.f32 %v207_v6, 0.0  ;;  %v1057_v6 = vrot.slane %v321_v58, %v79_v0 }
 0x102   :  { %v212_v11 = vpop.f32.mrf.mxu0 }
 0x103   :  { %v260_v13 = vmax.f32 %v209_v9, 0.0  ;;  %v281_v17 = vpack.c.bf16 %v259_v10, %v257_v14  ;;  %v213_v21 = vadd.f32 %v212_v11, %v1005_v5  ;;  %v655_v14 = vld [vmem:[#allocation2] sm:$0x1] }
 0x104   :  { %v214_v15 = vpop.f32.mrf.mxu0  ;;  %658 = vperm.xlu0 %786, %v655_v14  }
 0x105   :  { %v282_v16 = vpack.c.bf16 %v260_v13, %v258_v12  ;;  %v215_v19 = vadd.f32 %v214_v15, %v1002_v4  ;;  %v261_v28 = vmax.f32 %v213_v21, 0.0 }
 0x106   :  { %v216_v18 = vpop.f32.mrf.mxu0 }
 0x107   :  { %v217_v20 = vadd.f32 %v216_v18, %v1005_v5  ;;  %565 = vmatprep.mubr.bf16.mxu1 %v282_v16  ;;  %v262_v26 = vmax.f32 %v215_v19, 0.0 }
 0x108   :  { %v218_v22 = vpop.f32.mrf.mxu0  ;;  %566 = vmatmul.mubr.bf16.gmra.mxu1 %v281_v17 }
 0x109   :  { %v219_v23 = vadd.f32 %v218_v22, %v1002_v4  ;;  %v263_v24 = vmax.f32 %v217_v20, 0.0 }
 0x10a   :  { %v222_v25 = vpop.f32.mrf.mxu0 }
 0x10b   :  { %v264_v27 = vmax.f32 %v219_v23, 0.0  ;;  %v283_v31 = vpack.c.bf16 %v263_v24, %v261_v28  ;;  %v223_v35 = vadd.f32 %v222_v25, %v1005_v5 }
 0x10c   :  { %v224_v29 = vpop.f32.mrf.mxu0 }
 0x10d   :  { %v284_v30 = vpack.c.bf16 %v264_v27, %v262_v26  ;;  %v225_v33 = vadd.f32 %v224_v29, %v1002_v4  ;;  %v265_v42 = vmax.f32 %v223_v35, 0.0 }
 0x10e   :  { %v226_v32 = vpop.f32.mrf.mxu0 }
 0x10f   :  { %v227_v34 = vadd.f32 %v226_v32, %v1005_v5  ;;  %575 = vmatprep.mubr.bf16.mxu1 %v284_v30  ;;  %v266_v40 = vmax.f32 %v225_v33, 0.0 }
 0x110   :  { %v228_v36 = vpop.f32.mrf.mxu0  ;;  %576 = vmatmul.mubr.bf16.gmra.mxu1 %v283_v31 }
 0x111   :  { %v229_v37 = vadd.f32 %v228_v36, %v1002_v4  ;;  %v267_v38 = vmax.f32 %v227_v34, 0.0 }
 0x112   :  { %v232_v39 = vpop.f32.mrf.mxu0 }
 0x113   :  { %v268_v41 = vmax.f32 %v229_v37, 0.0  ;;  %v285_v45 = vpack.c.bf16 %v267_v38, %v265_v42  ;;  %v233_v49 = vadd.f32 %v232_v39, %v1005_v5 }
 0x114   :  { %v234_v43 = vpop.f32.mrf.mxu0 }
 0x115   :  { %v286_v44 = vpack.c.bf16 %v268_v41, %v266_v40  ;;  %v235_v47 = vadd.f32 %v234_v43, %v1002_v4  ;;  %v269_v55 = vmax.f32 %v233_v49, 0.0 }
 0x116   :  { %v236_v46 = vpop.f32.mrf.mxu0 }
 0x117   :  { %v237_v48 = vadd.f32 %v236_v46, %v1005_v5  ;;  %585 = vmatprep.mubr.bf16.mxu1 %v286_v44  ;;  %v270_v53 = vmax.f32 %v235_v47, 0.0  ;;  %v1045_v5 = vld.sshfl [vmem:[%s1130_s5] sm:$0x11 pattern:$0x75316420] }
 0x118   :  { %v238_v50 = vpop.f32.mrf.mxu0  ;;  %586 = vmatmul.mubr.bf16.gmra.mxu1 %v285_v45  ;;  %v673_v62 = vcombine.high %v1045_v5, %v1045_v5 }
 0x119   :  { %v239_v51 = vadd.f32 %v238_v50, %v1002_v4  ;;  %v271_v52 = vmax.f32 %v237_v48, 0.0  ;;  %v676_v4 = vunpack.c.0.s8 %v675_v60 }
 0x11b   :  { %v272_v54 = vmax.f32 %v239_v51, 0.0  ;;  %v287_v57 = vpack.c.bf16 %v271_v52, %v269_v55  ;;  %v1053_v3 = vsub.s32 %v676_v4, %v991_v63 }
 0x11d   :  { %v288_v56 = vpack.c.bf16 %v272_v54, %v270_v53  ;;  %v680_v8 = vrot.slane %v1045_v5, %v1053_v3  ;;  %v687_v9 = vrot.slane %v673_v62, %v1053_v3 }
 0x11f   :  { %595 = vmatprep.mubr.bf16.mxu1 %v288_v56  ;;  %722 = vmatprep.mubr.bf16.mxu0 %v687_v9 }
 0x120   :  { %596 = vmatmul.mubr.bf16.gmra.mxu1 %v287_v57 }
 0x1a8   :  { %v527_v2 = vpop.f32.mrf.mxu1 }
 0x1a9   :  { %v528_v10 = vadd.f32 %v527_v2, %v1048_v61 }
 0x1aa   :  { %v529_v7 = vpop.f32.mrf.mxu1 }
 0x1ab   :  { %v530_v12 = vadd.f32 %v529_v7, %v1057_v6  ;;  %v606_v63 = vmax.f32 %v528_v10, 0.0 }
 0x1ac   :  { %v531_v11 = vpop.f32.mrf.mxu1 }
 0x1ad   :  { %v532_v13 = vadd.f32 %v531_v11, %v1048_v61  ;;  %v607_v18 = vmax.f32 %v530_v12, 0.0 }
 0x1ae   :  { %v533_v15 = vpop.f32.mrf.mxu1 }
 0x1af   :  { %v608_v0 = vmax.f32 %v532_v13, 0.0  ;;  %v534_v16 = vadd.f32 %v533_v15, %v1057_v6 }
 0x1b0   :  { %v537_v17 = vpop.f32.mrf.mxu1 }
 0x1b1   :  { %v1066_v19 = vpack.c.bf16 %v608_v0, %v606_v63  ;;  %v609_v20 = vmax.f32 %v534_v16, 0.0  ;;  %v538_v23 = vadd.f32 %v537_v17, %v1048_v61 }
 0x1b2   :  { %v539_v21 = vpop.f32.mrf.mxu1 }
 0x1b3   :  { %v1068_v22 = vpack.c.bf16 %v609_v20, %v607_v18  ;;  %v540_v25 = vadd.f32 %v539_v21, %v1057_v6  ;;  %v610_v28 = vmax.f32 %v538_v23, 0.0 }
 0x1b4   :  { %v541_v24 = vpop.f32.mrf.mxu1 }
 0x1b5   :  { %v542_v26 = vadd.f32 %v541_v24, %v1048_v61  ;;  %v611_v32 = vmax.f32 %v540_v25, 0.0 }
 0x1b6   :  { %v543_v27 = vpop.f32.mrf.mxu1 }
 0x1b7   :  { %v612_v29 = vmax.f32 %v542_v26, 0.0  ;;  %v544_v30 = vadd.f32 %v543_v27, %v1057_v6 }
 0x1b8   :  { %v547_v31 = vpop.f32.mrf.mxu1 }
 0x1b9   :  { %v1074_v33 = vpack.c.bf16 %v612_v29, %v610_v28  ;;  %v613_v34 = vmax.f32 %v544_v30, 0.0  ;;  %v548_v37 = vadd.f32 %v547_v31, %v1048_v61 }
 0x1ba   :  { %v549_v35 = vpop.f32.mrf.mxu1 }
 0x1bb   :  { %v1076_v36 = vpack.c.bf16 %v613_v34, %v611_v32  ;;  %v550_v39 = vadd.f32 %v549_v35, %v1057_v6  ;;  %v614_v42 = vmax.f32 %v548_v37, 0.0 }
 0x1bc   :  { %v551_v38 = vpop.f32.mrf.mxu1 }
 0x1bd   :  { %v552_v40 = vadd.f32 %v551_v38, %v1048_v61  ;;  %v615_v46 = vmax.f32 %v550_v39, 0.0 }
 0x1be   :  { %v553_v41 = vpop.f32.mrf.mxu1 }
 0x1bf   :  { %v616_v43 = vmax.f32 %v552_v40, 0.0  ;;  %v554_v44 = vadd.f32 %v553_v41, %v1057_v6 }
 0x1c0   :  { %v557_v45 = vpop.f32.mrf.mxu1 }
 0x1c1   :  { %v1082_v47 = vpack.c.bf16 %v616_v43, %v614_v42  ;;  %v617_v48 = vmax.f32 %v554_v44, 0.0  ;;  %v558_v51 = vadd.f32 %v557_v45, %v1048_v61 }
 0x1c2   :  { %v1084_v49 = vpop.f32.mrf.mxu1 }
 0x1c3   :  { %v1086_v50 = vpack.c.bf16 %v617_v48, %v615_v46  ;;  %v618_v55 = vmax.f32 %v558_v51, 0.0 }
 0x1c4   :  { %v561_v52 = vpop.f32.mrf.mxu1 }
 0x1c5   :  { %v562_v53 = vadd.f32 %v561_v52, %v1048_v61 }
 0x1c6   :  { %v563_v54 = vpop.f32.mrf.mxu1 }
 0x1c7   :  { %v620_v56 = vmax.f32 %v562_v53, 0.0 }
 0x1c8   :  { %v567_v57 = vpop.f32.mrf.mxu1 }
 0x1c9   :  { %v1090_v58 = vpack.c.bf16 %v620_v56, %v618_v55 }
 0x1ca   :  { %v569_v59 = vpop.f32.mrf.mxu1 }
 0x1cb   :  { %v570_v51 = vadd.f32 %v569_v59, %v1057_v6 }
 0x1cc   :  { %v571_v60 = vpop.f32.mrf.mxu1 }
 0x1cd   :  { %v623_v56 = vmax.f32 %v570_v51, 0.0 }
 0x1ce   :  { %v573_v4 = vpop.f32.mrf.mxu1 }
 0x1cf   :  { %v574_v45 = vadd.f32 %v573_v4, %v1057_v6  ;;  %v560_v4 = vadd.f32 %v1084_v49, %v1057_v6 }
 0x1d0   :  { %v577_v62 = vpop.f32.mrf.mxu1 }
 0x1d1   :  { %v578_v48 = vadd.f32 %v577_v62, %v1048_v61  ;;  %v625_v53 = vmax.f32 %v574_v45, 0.0 }
 0x1d2   :  { %v579_v2 = vpop.f32.mrf.mxu1 }
 0x1d3   :  { %v580_v38 = vadd.f32 %v579_v2, %v1057_v6  ;;  %v626_v55 = vmax.f32 %v578_v48, 0.0  ;;  %v572_v2 = vadd.f32 %v571_v60, %v1048_v61 }
 0x1d4   :  { %v581_v7 = vpop.f32.mrf.mxu1 }
 0x1d5   :  { %v627_v42 = vmax.f32 %v580_v38, 0.0  ;;  %v582_v43 = vadd.f32 %v581_v7, %v1048_v61  ;;  %v647_v7 = vpack.c.bf16 %v625_v53, %v623_v56  ;;  %v624_v62 = vmax.f32 %v572_v2, 0.0 }
 0x1d6   :  { %v583_v9 = vpop.f32.mrf.mxu1 }
 0x1d7   :  { %v584_v34 = vadd.f32 %v583_v9, %v1057_v6  ;;  %v628_v52 = vmax.f32 %v582_v43, 0.0 }
 0x1d8   :  { %v587_v10 = vpop.f32.mrf.mxu1 }
 0x1d9   :  { %v588_v37 = vadd.f32 %v587_v10, %v1048_v61  ;;  %v629_v40 = vmax.f32 %v584_v34, 0.0  ;;  %v648_v9 = vpack.c.bf16 %v628_v52, %v626_v55  ;;  %v564_v10 = vadd.f32 %v563_v54, %v1057_v6 }
 0x1da   :  { %v589_v11 = vpop.f32.mrf.mxu1 }
 0x1db   :  { %v590_v21 = vadd.f32 %v589_v11, %v1057_v6  ;;  %v630_v41 = vmax.f32 %v588_v37, 0.0  ;;  %v649_v46 = vpack.c.bf16 %v629_v40, %v627_v42  ;;  %v568_v11 = vadd.f32 %v567_v57, %v1048_v61 }
 0x1dc   :  { %v591_v12 = vpop.f32.mrf.mxu1  ;;  %v621_v59 = vmax.f32 %v564_v10, 0.0 }
 0x1dd   :  { %v631_v29 = vmax.f32 %v590_v21, 0.0  ;;  %v592_v31 = vadd.f32 %v591_v12, %v1048_v61  ;;  %v622_v12 = vmax.f32 %v568_v11, 0.0 }
 0x1de   :  { %v593_v13 = vpop.f32.mrf.mxu1 }
 0x1df   :  { %v594_v0 = vadd.f32 %v593_v13, %v1057_v6  ;;  %v632_v39 = vmax.f32 %v592_v31, 0.0  ;;  %v619_v13 = vmax.f32 %v560_v4, 0.0 }
 0x1e0   :  { %v597_v14 = vpop.f32.mrf.mxu1 }
 0x1e1   :  { %v598_v18 = vadd.f32 %v597_v14, %v1048_v61  ;;  %v633_v25 = vmax.f32 %v594_v0, 0.0  ;;  %v650_v44 = vpack.c.bf16 %v632_v39, %v630_v41  ;;  %v646_v14 = vpack.c.bf16 %v624_v62, %v622_v12 }
 0x1e2   :  { %v599_v15 = vpop.f32.mrf.mxu1 }
 0x1e3   :  { %v600_v16 = vadd.f32 %v599_v15, %v1057_v6  ;;  %v634_v28 = vmax.f32 %v598_v18, 0.0  ;;  %v651_v35 = vpack.c.bf16 %v633_v25, %v631_v29  ;;  %v645_v15 = vpack.c.bf16 %v621_v59, %v619_v13 }
 0x1e4   :  { %v601_v63 = vpop.f32.mrf.mxu1 }
 0x1e5   :  { %v602_v17 = vadd.f32 %v601_v63, %v1048_v61  ;;  %v635_v26 = vmax.f32 %v600_v16, 0.0  ;;  %v659_v61 = vpop.permute.xlu0 %658 }
 0x1e6   :  { %v603_v20 = vpop.f32.mrf.mxu1 }
 0x1e7   :  { %v604_v23 = vadd.f32 %v603_v20, %v1057_v6  ;;  %v636_v24 = vmax.f32 %v602_v17, 0.0  ;;  %v664_v6 = vrot.slane %v659_v61, %v995_v1 }
 0x1e9   :  { %v637_v27 = vmax.f32 %v604_v23, 0.0  ;;  %v652_v32 = vpack.c.bf16 %v636_v24, %v634_v28 }
 0x1eb   :  { %v653_v30 = vpack.c.bf16 %v637_v27, %v635_v26 }
 0x1ed   :  { %690 = vmatprep.subr.bf16.mxu0 %v653_v30 }
 0x1ee   :  { %691 = vmatpush1.bf16.xpose.msra.mxu0 %v652_v32 }
 0x1ef   :  { %692 = vmatprep.subr.bf16.mxu0 %v651_v35 }
 0x1f6   :  { %693 = vmatpush1.bf16.xpose.msra.mxu0 %v650_v44 }
 0x1f7   :  { %694 = vmatprep.subr.bf16.mxu0 %v649_v46 }
 0x1fe   :  { %695 = vmatpush1.bf16.xpose.msra.mxu0 %v648_v9 }
 0x1ff   :  { %696 = vmatprep.subr.bf16.mxu0 %v647_v7 }
 0x206   :  { %697 = vmatpush1.bf16.xpose.msra.mxu0 %v646_v14 }
 0x207   :  { %698 = vmatprep.subr.bf16.mxu0 %v645_v15 }
 0x20e   :  { %699 = vmatpush1.bf16.xpose.msra.mxu0 %v1090_v58 }
 0x20f   :  { %700 = vmatprep.subr.bf16.mxu0 %v1086_v50 }
 0x216   :  { %701 = vmatpush1.bf16.xpose.msra.mxu0 %v1082_v47 }
 0x217   :  { %702 = vmatprep.subr.bf16.mxu0 %v1076_v36 }
 0x21e   :  { %703 = vmatpush1.bf16.xpose.msra.mxu0 %v1074_v33 }
 0x21f   :  { %704 = vmatprep.subr.bf16.mxu0 %v1068_v22 }
 0x226   :  { %705 = vmatpush1.bf16.xpose.msra.mxu0 %v1066_v19 }
 0x22d   :  { %723 = vmatmul.mubr.bf16.vlgmr.msra.gmra.mxu0 %v680_v8 }
 0x2ed   :  { %v724_v49 = vpop.f32.mrf.mxu0 }
 0x2ee   :  { %v725_v54 = vadd.f32 %v724_v49, %v664_v6 }
 0x2ef   :  { %v726_v50 = vpop.f32.mrf.mxu0 }
 0x2f0   :  { %730 = vst [vmem:[%s1132_s7] sm:$0x1] %v725_v54 }
 0x2f1   :  { %v727_v36 = vpop.f32.mrf.mxu0 }
 0x2f3   :  { %v728_v33 = vpop.f32.mrf.mxu0 }
 0x2f4   :  { %735 = vsyncpa [#allocation4], 1 }

</bundles_post_ra>
